<compile_context>
chip_gen: v7x
topology: tpu7x:2x2x1
jax: 0.10.0
libtpu: 0.0.40
codegen_flags: <defaults>
</compile_context>

<pallas_src>
import functools

import jax
import jax.numpy as jnp
from jax import lax
from jax.experimental import pallas as pl
from jax.experimental.pallas import tpu as pltpu


def _lsce_kernel(preds_ref, target_ref, out_ref, acc_ref, *,
                 epsilon: float, n_rows: int, n_classes: int,
                 blocks_per_split: int, gather_native: bool):
    i = pl.program_id(0)      # core-split axis ("parallel"; shards across TCs on v7x)
    j = pl.program_id(1)      # batch-block axis ("arbitrary"; carries the accumulator)

    @pl.when(j == 0)
    def _():
        acc_ref[...] = jnp.zeros_like(acc_ref)

    xn = preds_ref[...]                                    # (TB, C) native dtype
    tb, c = xn.shape
    x = xn.astype(jnp.float32)                             # f32 only for max/exp/log path

    # Valid-row mask. gblk is the *unclamped* global block id, so rows of grid
    # steps whose index_map was clamped (overhang of the 2-D grid) mask to False,
    # as do padded rows of the partial last block. No full-tile sanitize.
    gblk = i * blocks_per_split + j
    row_ids = gblk * tb + lax.broadcasted_iota(jnp.int32, (tb, 1), 0)
    row_mask = row_ids < n_rows                            # (TB, 1)

    # Row statistics only.
    m = jnp.max(x, axis=-1, keepdims=True)                 # (TB, 1)
    t = x - m                                              # (TB, C), <= 0
    s = jnp.sum(jnp.exp(t), axis=-1, keepdims=True)        # (TB, 1)  EUP exp
    logs = jnp.log(s)                                      # (TB, 1)
    sum_centered = jnp.sum(t, axis=-1, keepdims=True)      # (TB, 1)
    # -sum_c log_softmax(x)_c = C*lse - sum_c x = C*log(s) - sum_c (x - m)
    smooth_rows = jnp.float32(n_classes) * logs - sum_centered

    # One-hot gather of x[b, target[b]]; (1, C) iota broadcast by the compare.
    col_ids = lax.broadcasted_iota(jnp.int32, (1, c), 1)   # (1, C)
    onehot = col_ids == target_ref[...]                    # (TB, C) bool
    if gather_native:
        # Compare/select on the native (e.g. bf16) tile; exact because at most one
        # non-zero element per row survives the select.  (v6e/v7x bf16 VPU.)
        gathered = jnp.sum(jnp.where(onehot, xn, jnp.zeros_like(xn)),
                           axis=-1, keepdims=True).astype(jnp.float32)
    else:
        gathered = jnp.sum(jnp.where(onehot, x, 0.0), axis=-1, keepdims=True)
    # -log_softmax(x)[b, target[b]] = lse - x[b, target[b]]
    nll_rows = (logs + m) - gathered

    # Fused accumulator: epsilon*(smooth/C) + (1-eps)*nll, masked with a SELECT.
    combined = (jnp.float32(epsilon / n_classes) * smooth_rows
                + jnp.float32(1.0 - epsilon) * nll_rows)
    combined = jnp.where(row_mask, combined, 0.0)          # select, NOT *mask
    acc_ref[...] += jnp.sum(combined, axis=0, keepdims=True)

    @pl.when(j == pl.num_programs(1) - 1)
    def _():
        val = acc_ref[...] * jnp.float32(1.0 / n_rows)     # (1, 1) partial mean
        # Lane-dense (1, 8, 128) output block per core split (unmasked stores).
        out_ref[...] = jnp.broadcast_to(val[0, 0], out_ref.shape)


def _choose_block_rows(batch, n_classes, itemsize, target_bytes=4 * 1024 * 1024):
    """Batch tile sized for ~4 MiB per block (8 MiB double-buffered), rounded to
    the dtype's packed-sublane granule (8 f32 / 16 bf16 / 32 int8)."""
    granule = 8 * max(1, 4 // int(itemsize))
    rows = max(1, target_bytes // max(1, n_classes * int(itemsize)))
    tb = min(int(batch), int(rows))
    tb = max(granule, (tb // granule) * granule)
    return int(tb)


def _use_native_gather(dtype):
    """Do the one-hot compare/select in the input's native dtype?  Only pays off
    where the VPU handles sub-32-bit natively (v6e/v7x), not on v5e/v5p."""
    if jnp.dtype(dtype).itemsize >= 4:
        return False                     # f32 path is identical either way
    try:
        kind = jax.devices()[0].device_kind.lower()
    except Exception:
        kind = ""
    return "v5" not in kind


def label_smoothing_cross_entropy(preds, target, epsilon: float = 0.1,
                                  block_rows=None, num_core_splits: int = 2):
    """Pallas TPU forward of LabelSmoothingCrossEntropy (reduction='mean')."""
    B, C = preds.shape
    itemsize = jnp.dtype(preds.dtype).itemsize
    if block_rows is None:
        block_rows = _choose_block_rows(B, C, itemsize)
    tb = int(block_rows)
    num_blocks = int(pl.cdiv(B, tb))

    # Batch split across TensorCores via the leading "parallel" axis (~2x on v7x,
    # 2 TCs); on v5e/v6e (1 TC) it simply runs sequentially with negligible cost.
    splits = max(1, min(int(num_core_splits), num_blocks))
    bps = int(pl.cdiv(num_blocks, splits))   # blocks per core split
    last_block = num_blocks - 1

    target2d = target.reshape(B, 1).astype(jnp.int32)
    gather_native = _use_native_gather(preds.dtype)

    kernel = functools.partial(
        _lsce_kernel, epsilon=float(epsilon), n_rows=B, n_classes=C,
        blocks_per_split=bps, gather_native=gather_native)

    def block_map(i, j):
        # Clamp to the last valid block; the kernel masks overhang rows itself.
        return (jnp.minimum(i * bps + j, last_block), 0)

    cost = pl.CostEstimate(
        flops=6 * B * C,
        transcendentals=B * C,
        bytes_accessed=B * C * itemsize + B * 4 + splits * 8 * 128 * 4,
    )

    out = pl.pallas_call(
        kernel,
        out_shape=jax.ShapeDtypeStruct((splits, 8, 128), jnp.float32),
        grid_spec=pltpu.PrefetchScalarGridSpec(
            num_scalar_prefetch=0,
            grid=(splits, bps),
            in_specs=[
                pl.BlockSpec((tb, C), block_map),   # logits tile (native dtype)
                pl.BlockSpec((tb, 1), block_map),   # matching target slice
            ],
            out_specs=pl.BlockSpec((1, 8, 128), lambda i, j: (i, 0, 0)),
            scratch_shapes=[
                pltpu.VMEM((1, 1), jnp.float32),    # fused loss accumulator
            ],
        ),
        compiler_params=pltpu.CompilerParams(
            dimension_semantics=("parallel", "arbitrary"),
            vmem_limit_bytes=32 * 1024 * 1024,
        ),
        cost_estimate=cost,
    )(preds, target2d)

    # Each core split wrote its partial mean into its (8,128) block; sum them.
    return jnp.sum(out[:, 0, 0])


def _reference(preds, target, epsilon=0.1):
    # pure-JAX reference mirroring the PyTorch module
    log_preds = jax.nn.log_softmax(preds.astype(jnp.float32), axis=-1)
    n = preds.shape[-1]
    loss = jnp.mean(-jnp.sum(log_preds, axis=-1))
    nll = jnp.mean(-jnp.take_along_axis(log_preds, target[:, None], axis=-1)[:, 0])
    return epsilon * (loss / n) + (1.0 - epsilon) * nll


if __name__ == "__main__":
    B, C = 20, 128  # small shapes; B deliberately not a multiple of the tile
    key = jax.random.PRNGKey(0)
    k1, k2 = jax.random.split(key)
    preds = jax.random.normal(k1, (B, C), dtype=jnp.float32)
    target = jax.random.randint(k2, (B,), 0, C, dtype=jnp.int32)

    # f32 path; block_rows=8 forces a (2 core-splits x 2 blocks) grid with a
    # partial last block AND a fully-masked overhang grid step.
    out = label_smoothing_cross_entropy(preds, target, epsilon=0.1, block_rows=8)
    out = jax.block_until_ready(out)
    ref = _reference(preds, target, epsilon=0.1)
    assert jnp.allclose(out, ref, rtol=1e-5, atol=1e-5), (out, ref)

    # bf16 path: native-dtype HBM read, native-dtype one-hot gather on v6e/v7x,
    # f32 accumulation; auto-chosen (granule-aligned) tile.
    preds_bf16 = preds.astype(jnp.bfloat16)
    out_bf16 = label_smoothing_cross_entropy(preds_bf16, target, epsilon=0.1)
    out_bf16 = jax.block_until_ready(out_bf16)
    ref_bf16 = _reference(preds_bf16, target, epsilon=0.1)
    assert jnp.allclose(out_bf16, ref_bf16, rtol=1e-3, atol=1e-3), (out_bf16, ref_bf16)

    print("KERNEL_OK")
</pallas_src>

<mosaic_0001>
module attributes {stable_mosaic.version = 11 : i64} {
  func.func @_lsce_kernel(%arg0: i32, %arg1: i32, %arg2: memref<8x128xf32, #tpu.memory_space<vmem>>, %arg3: memref<8x1xi32, #tpu.memory_space<vmem>>, %arg4: memref<1x8x128xf32, #tpu.memory_space<vmem>>, %arg5: memref<1x1xf32, #tpu.memory_space<vmem>>) attributes {dimension_semantics = [#tpu.dimension_semantics<parallel>, #tpu.dimension_semantics<arbitrary>], iteration_bounds = array<i64: 2, 2>, scalar_prefetch = 0 : i64, scratch_operands = 1 : i64, tpu.core_type = #tpu.core_type<tc>, window_params = [{transform_indices = @transform_0, window_bounds = array<i64: 8, 128>}, {transform_indices = @transform_1, window_bounds = array<i64: 8, 1>}, {transform_indices = @transform_2, window_bounds = array<i64: 1, 8, 128>}]} {
    %c0_i32 = arith.constant 0 : i32
    %0 = arith.cmpi eq, %arg1, %c0_i32 : i32
    %1 = arith.extui %0 : i1 to i32
    %c0_i32_0 = arith.constant 0 : i32
    %2 = arith.cmpi ne, %1, %c0_i32_0 : i32
    scf.if %2 {
      %cst_18 = arith.constant 0.000000e+00 : f32
      %51 = vector.broadcast %cst_18 : f32 to vector<1x1xf32>
      %c0_19 = arith.constant 0 : index
      %c0_20 = arith.constant 0 : index
      %52 = vector.load %arg5[%c0_19, %c0_20] : memref<1x1xf32, #tpu.memory_space<vmem>>, vector<1x1xf32>
      tpu.vector_store %arg5[%c0_19, %c0_20], %51 {strides = array<i32>} : memref<1x1xf32, #tpu.memory_space<vmem>>, vector<1x1xf32>,
    } else {
    }
    %c0 = arith.constant 0 : index
    %c0_1 = arith.constant 0 : index
    %3 = vector.load %arg2[%c0, %c0_1] : memref<8x128xf32, #tpu.memory_space<vmem>>, vector<8x128xf32>
    %c2_i32 = arith.constant 2 : i32
    %4 = arith.muli %arg0, %c2_i32 : i32
    %5 = arith.addi %4, %arg1 : i32
    %c8_i32 = arith.constant 8 : i32
    %6 = arith.muli %5, %c8_i32 : i32
    %7 = tpu.iota {dimensions = array<i32: 0>} : vector<8x1xi32>
    %8 = vector.broadcast %6 : i32 to vector<8x1xi32>
    %9 = arith.addi %8, %7 : vector<8x1xi32>
    %c20_i32 = arith.constant 20 : i32
    %10 = vector.broadcast %c20_i32 : i32 to vector<8x1xi32>
    %11 = arith.cmpi slt, %9, %10 : vector<8x1xi32>
    %cst = arith.constant dense<0xFF800000> : vector<8xf32>
    %12 = vector.multi_reduction <maximumf>, %3, %cst [1] : vector<8x128xf32> to vector<8xf32>
    %13 = vector.shape_cast %12 : vector<8xf32> to vector<8x1xf32>
    %14 = vector.broadcast %13 : vector<8x1xf32> to vector<8x128xf32>
    %15 = arith.subf %3, %14 : vector<8x128xf32>
    %16 = math.exp %15 : vector<8x128xf32>
    %cst_2 = arith.constant dense<0.000000e+00> : vector<8xf32>
    %17 = vector.multi_reduction <add>, %16, %cst_2 [1] : vector<8x128xf32> to vector<8xf32>
    %18 = vector.shape_cast %17 : vector<8xf32> to vector<8x1xf32>
    %19 = math.log %18 : vector<8x1xf32>
    %cst_3 = arith.constant dense<0.000000e+00> : vector<8xf32>
    %20 = vector.multi_reduction <add>, %15, %cst_3 [1] : vector<8x128xf32> to vector<8xf32>
    %21 = vector.shape_cast %20 : vector<8xf32> to vector<8x1xf32>
    %cst_4 = arith.constant 1.280000e+02 : f32
    %22 = vector.broadcast %cst_4 : f32 to vector<8x1xf32>
    %23 = arith.mulf %22, %19 : vector<8x1xf32>
    %24 = arith.subf %23, %21 : vector<8x1xf32>
    %25 = tpu.iota {dimensions = array<i32: 1>} : vector<1x128xi32>
    %c0_5 = arith.constant 0 : index
    %c0_6 = arith.constant 0 : index
    %26 = vector.load %arg3[%c0_5, %c0_6] : memref<8x1xi32, #tpu.memory_space<vmem>>, vector<8x1xi32>
    %27 = vector.broadcast %25 : vector<1x128xi32> to vector<8x128xi32>
    %28 = vector.broadcast %26 : vector<8x1xi32> to vector<8x128xi32>
    %29 = arith.cmpi eq, %27, %28 : vector<8x128xi32>
    %cst_7 = arith.constant 0.000000e+00 : f32
    %30 = vector.broadcast %cst_7 : f32 to vector<8x128xf32>
    %31 = arith.select %29, %3, %30 : vector<8x128xi1>, vector<8x128xf32>
    %cst_8 = arith.constant dense<0.000000e+00> : vector<8xf32>
    %32 = vector.multi_reduction <add>, %31, %cst_8 [1] : vector<8x128xf32> to vector<8xf32>
    %33 = vector.shape_cast %32 : vector<8xf32> to vector<8x1xf32>
    %34 = arith.addf %19, %13 : vector<8x1xf32>
    %35 = arith.subf %34, %33 : vector<8x1xf32>
    %cst_9 = arith.constant 7.812500e-04 : f32
    %36 = vector.broadcast %cst_9 : f32 to vector<8x1xf32>
    %37 = arith.mulf %36, %24 : vector<8x1xf32>
    %cst_10 = arith.constant 0.899999976 : f32
    %38 = vector.broadcast %cst_10 : f32 to vector<8x1xf32>
    %39 = arith.mulf %38, %35 : vector<8x1xf32>
    %40 = arith.addf %37, %39 : vector<8x1xf32>
    %cst_11 = arith.constant 0.000000e+00 : f32
    %41 = vector.broadcast %cst_11 : f32 to vector<8x1xf32>
    %42 = arith.select %11, %40, %41 : vector<8x1xi1>, vector<8x1xf32>
    %c0_12 = arith.constant 0 : index
    %c0_13 = arith.constant 0 : index
    %43 = vector.load %arg5[%c0_12, %c0_13] : memref<1x1xf32, #tpu.memory_space<vmem>>, vector<1x1xf32>
    %cst_14 = arith.constant dense<0.000000e+00> : vector<1xf32>
    %44 = vector.multi_reduction <add>, %42, %cst_14 [0] : vector<8x1xf32> to vector<1xf32>
    %45 = vector.shape_cast %44 : vector<1xf32> to vector<1x1xf32>
    %46 = arith.addf %43, %45 : vector<1x1xf32>
    %c0_15 = arith.constant 0 : index
    %c0_16 = arith.constant 0 : index
    %47 = vector.load %arg5[%c0_15, %c0_16] : memref<1x1xf32, #tpu.memory_space<vmem>>, vector<1x1xf32>
    tpu.vector_store %arg5[%c0_15, %c0_16], %46 {strides = array<i32>} : memref<1x1xf32, #tpu.memory_space<vmem>>, vector<1x1xf32>,
    %c1_i32 = arith.constant 1 : i32
    %48 = arith.cmpi eq, %arg1, %c1_i32 : i32
    %49 = arith.extui %48 : i1 to i32
    %c0_i32_17 = arith.constant 0 : i32
    %50 = arith.cmpi ne, %49, %c0_i32_17 : i32
    scf.if %50 {
      %c0_18 = arith.constant 0 : index
      %c0_19 = arith.constant 0 : index
      %51 = vector.load %arg5[%c0_18, %c0_19] : memref<1x1xf32, #tpu.memory_space<vmem>>, vector<1x1xf32>
      %cst_20 = arith.constant 5.000000e-02 : f32
      %52 = vector.broadcast %cst_20 : f32 to vector<1x1xf32>
      %53 = arith.mulf %51, %52 : vector<1x1xf32>
      %54 = vector.extract %53[0, 0] : f32 from vector<1x1xf32>
      %55 = vector.broadcast %54 : f32 to vector<1x8x128xf32>
      %c0_21 = arith.constant 0 : index
      %c0_22 = arith.constant 0 : index
      %c0_23 = arith.constant 0 : index
      %56 = vector.load %arg4[%c0_21, %c0_22, %c0_23] : memref<1x8x128xf32, #tpu.memory_space<vmem>>, vector<1x8x128xf32>
      tpu.vector_store %arg4[%c0_21, %c0_22, %c0_23], %55 {strides = array<i32>} : memref<1x8x128xf32, #tpu.memory_space<vmem>>, vector<1x8x128xf32>,
    } else {
    }
    return
  }
  func.func @transform_0(%arg0: i32, %arg1: i32) -> (i32, i32) {
    %c2_i32 = arith.constant 2 : i32
    %0 = arith.muli %arg0, %c2_i32 : i32
    %1 = arith.addi %0, %arg1 : i32
    %c2_i32_0 = arith.constant 2 : i32
    %2 = arith.minsi %1, %c2_i32_0 : i32
    %c0_i32 = arith.constant 0 : i32
    %c0_i32_1 = arith.constant 0 : i32
    return %2, %c0_i32 : i32, i32
  }
  func.func @transform_1(%arg0: i32, %arg1: i32) -> (i32, i32) {
    %c2_i32 = arith.constant 2 : i32
    %0 = arith.muli %arg0, %c2_i32 : i32
    %1 = arith.addi %0, %arg1 : i32
    %c2_i32_0 = arith.constant 2 : i32
    %2 = arith.minsi %1, %c2_i32_0 : i32
    %c0_i32 = arith.constant 0 : i32
    %c0_i32_1 = arith.constant 0 : i32
    return %2, %c0_i32 : i32, i32
  }
  func.func @transform_2(%arg0: i32, %arg1: i32) -> (i32, i32, i32) {
    %c0_i32 = arith.constant 0 : i32
    %c0_i32_0 = arith.constant 0 : i32
    %c0_i32_1 = arith.constant 0 : i32
    return %arg0, %c0_i32, %c0_i32_0 : i32, i32, i32
  }
}

</mosaic_0001>

<bundles_post_ra>
// kernel: tpu_custom_call.1
= control target key start
LH: loop header
LB: loop body
LE: loop exit
PB: predicated region body
PF: predicated region fallthrough
CT: control target
= control target key end

     0   :  { %7 = vsyncpa [#allocation4], 0  ;;  %s752_s0 = inlined_call_operand.vmem [shape: f32[20,128], index: 0, kind: input, shape index: {}]   ;;  %s753_s1 = inlined_call_operand.vmem [shape: s32[20,1], index: 1, kind: input, shape index: {}]   ;;  %s754_s2 = inlined_call_operand.hbm [shape: f32[2,8,128], index: 2, kind: output, shape index: {}]  }
   0x1   :  { %9 = vsyncpa [#allocation4 + $0x1], 0  ;;  %s605_s9 = smov 0   ;;  %s607_s10 = smov 0  }
   0x2   :  { %s609_s11 = smov 0   ;;  %s611_s12 = smov 0  }
   0x3   :  { %s613_s13 = smov 0   ;;  %s615_s14 = smov 0  }
   0x4   :  { %s617_s15 = smov 0   ;;  %s619_s16 = smov 0  }
   0x5 LB: > { %s383_s17 = sadd.s32 4294967295, %s585_s16   ;;  %s384_s18 = sadd.s32 4294967294, %s585_s16   ;;  %s585_s16 = sphi %s619_s16, %s15_s16   ;;  %s581_s15 = sphi %s617_s15, %s763_s15   ;;  %s577_s14 = sphi %s615_s14, %s762_s14   ;;  %s573_s13 = sphi %s613_s13, %s761_s13   ;;  %s569_s12 = sphi %s611_s12, %s760_s12   ;;  %s565_s11 = sphi %s609_s11, %s759_s11   ;;  %s561_s10 = sphi %s607_s10, %s758_s10   ;;  %s557_s9 = sphi %s605_s9, %s757_s9  }
   0x6   : > { %s24_s19 = sadd.s32 1, %s577_s14  ;;  %s27_s20 = sadd.s32 1, %s581_s15 }
   0x7   : > { %p25_p0 = scmp.ge.s32.totalorder %s24_s19, 2  ;;  %p112_p1 = scmp.ne.s32.totalorder %s565_s11, %s561_s10 }
   0x8   : > { %p113_p2 = scmp.eq.s32.totalorder %s383_s17, 3  ;;  %p118_p4 = scmp.ne.s32.totalorder %s561_s10, %s557_s9 }
   0x9   : > { %s765_s19 = smov (%p25_p0, %s24_s19), 0  ;;  %s767_s20 = smov (!%p25_p0, %s27_s20), %s581_s15 }
   0xa   : > { %p654_p3 = por %p113_p2, %p112_p1  ;;  %p29_p5 = scmp.ge.s32.totalorder %s767_s20, 2 }
   0xb   : > { %p119_p6 = scmp.eq.s32.totalorder %s384_s18, 3  ;;  %p391_p7 = scmp.ge.s32.totalorder %s585_s16, 1 }
   0xc   : > { %p167_p8 = scmp.lt.s32.totalorder %s585_s16, 5  ;;  %s769_s20 = smov (%p29_p5, %s767_s20), 0 }
   0xd   : > { %p664_p9 = por %p119_p6, %p118_p4  ;;  %s99_s23 = ssub.s32 %s581_s15, %s769_s20 }
   0xe   : > { %p168_p10 = pnand %p391_p7, %p167_p8  ;;  %s102_s24 = sadd.s32 1, %s565_s11 }
   0xf   : > { %p100_p11 = scmp.eq.s32.totalorder %s99_s23, 0  ;;  %s197_s26 = sand.u32 (!%p168_p10), 1, %s561_s10  }
  0x10   : > { %171 = sbr.rel (%p168_p10) target bundleno = 453 (0x1c5), region = 28  ;;  %s393_s27 = sshll.u32 (!%p168_p10), %s573_s13, 1 }
  0x11   : > { %s672_s25 = scalar_select %p100_p11, %s565_s11, %s102_s24  }
  0x12   : > { %s678_s28 = sshll.u32 (!%p168_p10), %s197_s26, 3  ;;  %s681_s29 = sadd.s32 (!%p168_p10), %s569_s12, %s393_s27 }
  0x13   : > { %p202_p12 = scmp.lt.s32.totalorder (!%p168_p10), %s681_s29, 2  ;;  %s199_s18 = scalar_lea.vmem (!%p168_p10), [#allocation3], %s678_s28 }
  0x14   : > { %p403_p13 = scmp.ne.s32.totalorder (!%p168_p10), %s569_s12, 0 }
  0x17   : > { %s203_s30 = scalar_select %p202_p12, %s681_s29, 2 }
  0x18   : > { %227 = sbr.rel (%p403_p13) target bundleno = 31 (0x1f), region = 32  ;;  %vm228_vm0 = vcmask (!%p403_p13), 0   ;;  %v587_v0 = vmov (!%p403_p13), 0.0  }
  0x19   : > { %s771_s30 = smov (!%p202_p12, %s203_s30), 2  ;;  %229 = vst.msk [vmem:[#allocation2] sm:$0x1] (!%p403_p13), %vm228_vm0, %v587_v0 }
  0x1a   : > { %s397_s3 = sshll.u32 %s771_s30, 3 }
  0x1b   : > { %s207_s6 = scalar_lea.vmem %s752_s0, %s397_s3  ;;  %s219_s17 = scalar_lea.vmem %s753_s1, %s397_s3 }
  0x1f PF: > { %v230_v1 = vld [vmem:[%s207_s6] sm:$0xff]  ;;  %v588_v2 = vmov 0   ;;  %v234_v7 = vlaneseq  ;;  %s405_s23 = sshll.u32 %s681_s29, 3  ;;  %vm276_vm3 = vcmask 0   ;;  %p406_p0 = scmp.ne.s32.totalorder %s569_s12, 1 }
  0x20   : > { %239 = vmax.xlane.f32.xlu0 %v230_v1  ;;  %v254_v3 = vld [vmem:[%s219_s17] sm:$0xff]  ;;  %v236_v17 = vstv %s405_s23 }
  0x21   : > { %486 = vset.pattern.permute.xlu0 %v588_v2  ;;  %v253_v8 = vand.u32 127, %v234_v7  ;;  %v235_v15 = vshrl.u32 %v234_v7, 7  ;;  %v268_v33 = vld [vmem:[#allocation2] sm:$0x1] }
  0x23   : > { %v237_v21 = vadd.s32 %v236_v17, %v235_v15 }
  0x25   : > { %vm238_vm2 = vcmp.lt.s32.totalorder %v237_v21, 20 }
  0x36   : > { %256 = vperm.xlu0 %486, %v254_v3  }
  0xad   : > { %v240_v4 = vpop.xlane.xlu0 %239 }
  0xae   : > { %v241_v5 = vsub.f32 %v230_v1, %v240_v4 }
  0xb0   : > { %v242_v6 = vmul.f32 1.442695, %v241_v5 }
  0xb2   : > { %487 = vpow2.f32 %v242_v6 }
  0xb5   : > { %v257_v10 = vpop.permute.xlu0 %256 }
  0xb6   : > { %vm258_vm1 = vcmp.eq.s32.totalorder %v253_v8, %v257_v10 }
  0xb7   : > { %v259_v11 = vsel %vm258_vm1, %v230_v1, 0.0 }
  0xbc   : > { %v488_v9 = vpop.eup %487 }
  0xbd   : > { %244 = vadd.xlane.f32.xlu1 %v488_v9 }
  0xc1   : > { %248 = vadd.xlane.f32.xlu1 %v241_v5 }
  0xc5   : > { %260 = vadd.xlane.f32.xlu1 %v259_v11 }
 0x14a   : > { %v245_v12 = vpop.xlane.xlu1 %244 }
 0x14b   : > { %489 = vlog2.f32 %v245_v12 }
 0x14e   : > { %v249_v13 = vpop.xlane.xlu1 %248 }
 0x152   : > { %v261_v18 = vpop.xlane.xlu1 %260 }
 0x155   : > { %v490_v14 = vpop.eup %489 }
 0x156   : > { %v247_v16 = vmul.f32 0.6931472, %v490_v14 }
 0x158   : > { %v250_v19 = vmul.f32 128.0, %v247_v16  ;;  %v262_v20 = vadd.f32 %v247_v16, %v240_v4 }
 0x15a   : > { %v251_v22 = vsub.f32 %v250_v19, %v249_v13  ;;  %v263_v23 = vsub.f32 %v262_v20, %v261_v18 }
 0x15c   : > { %v264_v24 = vmul.f32 0.00078125, %v251_v22  ;;  %v265_v25 = vmul.f32 0.9, %v263_v23 }
 0x15e   : > { %v266_v26 = vadd.f32 %v265_v25, %v264_v24 }
 0x160   : > { %v267_v27 = vsel %vm238_vm2, %v266_v26, 0.0 }
 0x161   : > { %v269_v28 = vrot.slane %v267_v27, 4 }
 0x163   : > { %v270_v29 = vadd.f32 %v269_v28, %v267_v27 }
 0x165   : > { %v271_v30 = vrot.slane %v270_v29, 2 }
 0x167   : > { %v272_v31 = vadd.f32 %v271_v30, %v270_v29 }
 0x169   : > { %v273_v32 = vrot.slane %v272_v31, 1  ;;  %281 = sbr.rel (%p406_p0) target bundleno = 429 (0x1ad), region = 36 }
 0x16b   : > { %v274_v34 = vadd.f32 %v273_v32, %v272_v31 }
 0x16d   : > { %v275_v35 = vadd.f32 %v274_v34, %v268_v33 }
 0x16f   : > { %277 = vst.msk [vmem:[#allocation2] sm:$0x1] %vm276_vm3, %v275_v35 }
 0x176   : > { %v282_v36 = vld [vmem:[#allocation2] sm:$0x1] }
 0x177   : > { %v283_v37 = vmul.f32 0.05, %v282_v36 }
 0x179   : > { %411 = vpush %v283_v37 }
 0x1aa   : > { %s412_s24 = spop %411 }
 0x1ab   : > { %v285_v38 = vstv %s412_s24 }
 0x1ac   : > { %286 = vst [vmem:[%s199_s18] sm:$0xff] %v285_v38 }
 0x1ad PF: > { %s408_s27 = sshll.u32 %s573_s13, 7  ;;  %s301_s12 = sshll.u32 %s199_s18, 4  ;;  %s302_s12 = int_to_ptr.vmem [resolvable:$true] %s301_s12 }
 0x1ae   : > { %s701_s3 = scalar_lea.hbm %s754_s2, %s408_s27  ;;  %s288_s4 = scalar_lea.sflag [#allocation4], %s197_s26 }
 0x1af   : > { %s491_s5 = scalar_lea.vmem %s302_s12, 128  ;;  %s589_s6 = smov [#allocation3]  }
 0x1b0   : > { %p492_p1 = scmp.ne.s32.totalorder %s302_s12, %s491_s5  ;;  %s495_s7 = sshll.u32 %s589_s6, 4  ;;  %s496_s7 = int_to_ptr.vmem [resolvable:$false] %s495_s7 }
 0x1b1   : > { %s497_s8 = scalar_lea.vmem %s496_s7, 256  ;;  %p498_p5 = scmp.lt.s32.totalorder %s302_s12, %s496_s7 }
 0x1b2   : > { %p493_p2 = pnand %p492_p1, %p654_p3  ;;  %p499_p6 = scmp.lt.s32.totalorder %s497_s8, %s491_s5 }
 0x1b4   : > { %p494_p4 = pneg %p493_p2  ;;  %p500_p7 = por %p499_p6, %p498_p5 }
 0x1b6   : > { %p501_p8 = pnand %p500_p7, %p494_p4 }
 0x1b8   : > { %504 = shalt.err (!%p501_p8)
}
 0x1b9   : > { %s505_s13 = scalar_lea.hbm %s701_s3, 128  ;;  %s509_s17 = scalar_lea.hbm %s754_s2, 256 }
 0x1ba   : > { %p506_p10 = scmp.ne.s32.totalorder %s701_s3, %s505_s13  ;;  %p510_p13 = scmp.lt.u32.totalorder %s701_s3, %s754_s2 }
 0x1bb   : > { %p511_p0 = scmp.lt.u32.totalorder %s509_s17, %s505_s13  ;;  %p513_p2 = scmp.lt.u32.totalorder %s505_s13, %s701_s3 }
 0x1bc   : > { %p507_p11 = pnand %p506_p10, %p654_p3 }
 0x1bd   : > { %p512_p1 = por %p511_p0, %p510_p13 }
 0x1be   : > { %p508_p12 = pneg %p507_p11 }
 0x1bf   : > { %p514_p4 = por %p513_p2, %p512_p1 }
 0x1c1   : > { %p515_p5 = pnand %p514_p4, %p508_p12 }
 0x1c3   : > { %518 = shalt.err (!%p515_p5)
}
 0x1c4   : > { %413 = dma.vmem_to_hbm [thread:$0]  (%p654_p3), %s302_s12, 128, %s701_s3, %s288_s4  }
 0x1c5 PF: > { %p419_p6 = scmp.ge.s32.totalorder %s585_s16, 2  ;;  %s313_s24 = sand.u32 1, %s557_s9  }
 0x1c6   : > { %s314_s27 = scalar_lea.sflag [#allocation4], %s313_s24 }
 0x1c7   : > { %p416_p7 = pnand %p419_p6, %p664_p9 }
 0x1c9   : > { %552 = dma.done.wait (!%p416_p7), %s314_s27, 128  }
 0x1ca   : > { %554 = vsyncadd (!%p416_p7), %s314_s27, 4294967168  ;;  %s15_s16 = sadd.s32 1, %s585_s16   ;;  %s757_s9 = smov %s561_s10 }
 0x1cb   : > { %p12_p8 = scmp.ge.s32.totalorder %s15_s16, 6   ;;  %s758_s10 = smov %s565_s11 }
 0x1cc   : > { %s759_s11 = smov %s672_s25  ;;  %s760_s12 = smov %s577_s14 }
 0x1cd   : > { %s761_s13 = smov %s581_s15  ;;  %s762_s14 = smov %s765_s19 }
 0x1ce   : > { %s763_s15 = smov %s769_s20  ;;  %14 = sbr.rel (!%p12_p8) target bundleno = 5 (0x5), region = 74 }
 0x1d5   :  { %319 = vsyncpa [#allocation4], 1 }
 0x1d6   :  { %321 = vsyncpa [#allocation4 + $0x1], 1 }

</bundles_post_ra>
